<compile_context>
chip_gen: v5e
topology: v5e:2x2
jax: 0.10.0
libtpu: 0.0.40
codegen_flags: <defaults>
</compile_context>

<pallas_src>
import jax
import jax.numpy as jnp
from jax.experimental import pallas as pl
from jax.experimental.pallas import tpu as pltpu


def _round_up(v, m):
    return ((v + m - 1) // m) * m


def _vmem_capacity_bytes():
    """Per-core VMEM capacity; conservative 64 MiB (v7x) if the query fails."""
    try:
        info = pltpu.get_tpu_info()
        cap = getattr(info, "vmem_capacity_bytes", None)
        if cap:
            return int(cap)
    except Exception:
        pass
    return 64 << 20


def _projector_kernel(x_ref, w1_ref, b1_ref, w2_ref, b2_ref, o_ref):
    # fc1: MXU matmul with f32 accumulation; bias + ReLU in f32 on the VPU.
    h = jnp.dot(x_ref[...], w1_ref[...], preferred_element_type=jnp.float32)
    # Fuse the downcast into the ReLU so no separate full-tile cast pass is needed.
    h = jnp.maximum(h + b1_ref[...], 0.0).astype(w2_ref.dtype)
    # fc2: MXU matmul with f32 accumulation; bias in f32, then cast to output dtype.
    y = jnp.dot(h, w2_ref[...], preferred_element_type=jnp.float32)
    o_ref[...] = (y + b2_ref[...]).astype(o_ref.dtype)


def _make_projector_call(b_pad, in_p, out_p, tb, out_dtype, vmem_limit, cost,
                         single_buffer_weights):
    if single_buffer_weights:
        def const_spec(shape):
            # Block index never changes -> single-buffered residency in VMEM.
            return pl.BlockSpec(shape, lambda *_: (0,) * len(shape),
                                pipeline_mode=pl.Buffered(1))
    else:
        def const_spec(shape):
            return pl.BlockSpec(shape, lambda *_: (0,) * len(shape))

    return pl.pallas_call(
        _projector_kernel,
        out_shape=jax.ShapeDtypeStruct((b_pad, out_p), out_dtype),
        grid_spec=pltpu.PrefetchScalarGridSpec(
            num_scalar_prefetch=0,
            grid=(b_pad // tb,),
            in_specs=[
                pl.BlockSpec((tb, in_p), lambda i: (i, 0)),   # x: streamed per batch tile
                const_spec((in_p, in_p)),                     # w1: VMEM-resident
                const_spec((1, in_p)),                        # b1: VMEM-resident (f32)
                const_spec((in_p, out_p)),                    # w2: VMEM-resident
                const_spec((1, out_p)),                       # b2: VMEM-resident (f32)
            ],
            out_specs=pl.BlockSpec((tb, out_p), lambda i: (i, 0)),
        ),
        compiler_params=pltpu.CompilerParams(
            dimension_semantics=("parallel",),   # batch axis -> both TCs on v7x
            vmem_limit_bytes=vmem_limit,
        ),
        cost_estimate=cost,
    )


def projector_simclr(x, w1, b1, w2, b2, *, block_batch=None,
                     compute_dtype=jnp.bfloat16):
    """y = relu(x @ w1 + b1) @ w2 + b2  (SimCLR projection head).

    x:  (B, in_dim)
    w1: (in_dim, in_dim)   -- nn.Linear fc1 weight, pre-transposed
    b1: (in_dim,)
    w2: (in_dim, out_dim)  -- nn.Linear fc2 weight, pre-transposed
    b2: (out_dim,)
    Returns (B, out_dim) in x.dtype.
    """
    out_dtype = x.dtype
    B, in_dim = x.shape
    out_dim = w2.shape[-1]

    csize = jnp.dtype(compute_dtype).itemsize
    osize = jnp.dtype(out_dtype).itemsize
    # Sublane packing for the batch tile: 8 rows/vreg for 32-bit, 16 for bf16, 32 for 8-bit.
    pack = {4: 8, 2: 16, 1: 32}.get(csize, 8)

    vmem_cap = _vmem_capacity_bytes()
    if block_batch is None:
        block_batch = 512 if vmem_cap >= (100 << 20) else 256

    # Lane-dense padded feature dims (128-multiples keep vst unmasked).
    in_p = _round_up(max(in_dim, 128), 128)
    out_p = _round_up(max(out_dim, 128), 128)

    # Batch tile: pack-aligned, at most block_batch, and shrunk so the grid has at
    # least ~4 steps (2 per TensorCore on v7x) when B is large enough.
    tb = min(block_batch, _round_up(max(B, pack), pack))
    if _round_up(B, tb) // tb < 4:
        tb = min(block_batch, max(pack, _round_up((B + 3) // 4, pack)))
    b_pad = _round_up(max(B, tb), tb)

    # --- Operand preparation (fast path avoids HBM pad copies when already aligned) ---
    # Zero padding keeps the math exact: padded input features hit zero weight rows,
    # padded hidden units get zero bias -> relu(0)=0, padded output lanes are sliced off.
    if in_p == in_dim and b_pad == B:
        xp = x.astype(compute_dtype)
    else:
        xp = jnp.zeros((b_pad, in_p), compute_dtype).at[:B, :in_dim].set(
            x.astype(compute_dtype))

    if in_p == in_dim:
        w1p = w1.astype(compute_dtype)
    else:
        w1p = jnp.zeros((in_p, in_p), compute_dtype).at[:in_dim, :in_dim].set(
            w1.astype(compute_dtype))

    if in_p == in_dim and out_p == out_dim:
        w2p = w2.astype(compute_dtype)
    else:
        w2p = jnp.zeros((in_p, out_p), compute_dtype).at[:in_dim, :out_dim].set(
            w2.astype(compute_dtype))

    # Biases stay f32: they add onto the f32 MXU accumulators.
    b1p = b1.reshape(1, in_dim).astype(jnp.float32)
    if in_p != in_dim:
        b1p = jnp.zeros((1, in_p), jnp.float32).at[:, :in_dim].set(b1p)
    b2p = b2.reshape(1, out_dim).astype(jnp.float32)
    if out_p != out_dim:
        b2p = jnp.zeros((1, out_p), jnp.float32).at[:, :out_dim].set(b2p)

    # --- VMEM budget (per TensorCore) ---
    def budget(weight_bufs):
        weight_bytes = weight_bufs * ((in_p * in_p + in_p * out_p) * csize
                                      + (in_p + out_p) * 4)
        tile_bytes = 2 * tb * in_p * csize + 2 * tb * out_p * osize  # double-buffered x/out
        interm_bytes = tb * (in_p + out_p) * 4                       # f32 h / y accumulators
        return int(1.25 * (weight_bytes + tile_bytes + interm_bytes)) + (2 << 20)

    vmem_ceiling = int(0.85 * vmem_cap)

    def limit(weight_bufs):
        return max(16 << 20, min(budget(weight_bufs), vmem_ceiling))

    # TODO(synk): if in_dim grows so large that w1 (in_p x in_p) cannot stay VMEM-resident
    # (esp. v7x 64 MiB/TC), chunk the hidden dim: acc += relu(x @ w1[:, c] + b1[c]) @ w2[c, :]
    # over an 'arbitrary' grid axis with a (tb, out_p) f32 accumulator scratch.

    cost = pl.CostEstimate(
        flops=2 * b_pad * in_p * (in_p + out_p),
        transcendentals=0,
        bytes_accessed=(b_pad * in_p * csize
                        + (in_p * in_p + in_p * out_p) * csize + (in_p + out_p) * 4
                        + b_pad * out_p * osize),
    )

    try:
        call = _make_projector_call(b_pad, in_p, out_p, tb, out_dtype,
                                    limit(1), cost, single_buffer_weights=True)
        y_padded = call(xp, w1p, b1p, w2p, b2p)
    except Exception:
        # Fallback: default double-buffered weight specs (budget accounts for 2x weights).
        call = _make_projector_call(b_pad, in_p, out_p, tb, out_dtype,
                                    limit(2), cost, single_buffer_weights=False)
        y_padded = call(xp, w1p, b1p, w2p, b2p)

    return y_padded[:B, :out_dim]


def _reference(x, w1, b1, w2, b2):
    h = jnp.maximum(x @ w1 + b1, 0.0)
    return h @ w2 + b2


if __name__ == "__main__":
    key = jax.random.PRNGKey(0)

    # ---- Case 1: small, unaligned shapes (exercises the zero-pad path) ----
    B, in_dim, out_dim = 8, 32, 16
    kx, k1, k2, k3, k4 = jax.random.split(key, 5)
    x = jax.random.normal(kx, (B, in_dim), dtype=jnp.float32)

    # nn.Linear-style uniform(-1/sqrt(fan_in), +1/sqrt(fan_in)) init.
    bound = 1.0 / (in_dim ** 0.5)
    w1 = jax.random.uniform(k1, (in_dim, in_dim), jnp.float32, -bound, bound)
    b1 = jax.random.uniform(k2, (in_dim,), jnp.float32, -bound, bound)
    w2 = jax.random.uniform(k3, (in_dim, out_dim), jnp.float32, -bound, bound)
    b2 = jax.random.uniform(k4, (out_dim,), jnp.float32, -bound, bound)

    ref = _reference(x, w1, b1, w2, b2)

    # f32 matmul path: bit-for-bit close to the reference.
    out_f32 = projector_simclr(x, w1, b1, w2, b2, compute_dtype=jnp.float32)
    jax.block_until_ready(out_f32)
    assert out_f32.shape == (B, out_dim)
    assert jnp.allclose(out_f32, ref, atol=1e-5, rtol=1e-5)

    # Default bf16 matmul inputs with f32 accumulation (production path); looser tolerance.
    out_bf16 = projector_simclr(x, w1, b1, w2, b2)
    jax.block_until_ready(out_bf16)
    assert out_bf16.shape == (B, out_dim)
    assert jnp.allclose(out_bf16, ref, atol=5e-2, rtol=5e-2)

    # ---- Case 2: 128-aligned dims + tile-aligned batch (no-pad fast path, multi-step grid) ----
    B2, d2, o2 = 64, 128, 128
    ka, kb, kc, kd, ke = jax.random.split(jax.random.PRNGKey(0), 5)
    x2 = jax.random.normal(ka, (B2, d2), dtype=jnp.float32)
    bound2 = 1.0 / (d2 ** 0.5)
    w1b = jax.random.uniform(kb, (d2, d2), jnp.float32, -bound2, bound2)
    b1b = jax.random.uniform(kc, (d2,), jnp.float32, -bound2, bound2)
    w2b = jax.random.uniform(kd, (d2, o2), jnp.float32, -bound2, bound2)
    b2b = jax.random.uniform(ke, (o2,), jnp.float32, -bound2, bound2)

    ref2 = _reference(x2, w1b, b1b, w2b, b2b)
    out2 = projector_simclr(x2, w1b, b1b, w2b, b2b, compute_dtype=jnp.float32)
    jax.block_until_ready(out2)
    assert out2.shape == (B2, o2)
    assert jnp.allclose(out2, ref2, atol=1e-5, rtol=1e-5)

    print("KERNEL_OK")
</pallas_src>

<mosaic_0001>
module attributes {stable_mosaic.version = 11 : i64} {
  func.func @_projector_kernel(%arg0: i32, %arg1: memref<8x128xf32, #tpu.memory_space<vmem>>, %arg2: memref<128x128xf32, #tpu.memory_space<vmem>>, %arg3: memref<1x128xf32, #tpu.memory_space<vmem>>, %arg4: memref<128x128xf32, #tpu.memory_space<vmem>>, %arg5: memref<1x128xf32, #tpu.memory_space<vmem>>, %arg6: memref<8x128xf32, #tpu.memory_space<vmem>>) attributes {dimension_semantics = [#tpu.dimension_semantics<parallel>], iteration_bounds = array<i64: 1>, scalar_prefetch = 0 : i64, scratch_operands = 0 : i64, tpu.core_type = #tpu.core_type<tc>, window_params = [{transform_indices = @transform_0, window_bounds = array<i64: 8, 128>}, {pipeline_mode = #tpu.pipeline_mode<synchronous>, transform_indices = @transform_1, window_bounds = array<i64: 128, 128>}, {pipeline_mode = #tpu.pipeline_mode<synchronous>, transform_indices = @transform_2, window_bounds = array<i64: 1, 128>}, {pipeline_mode = #tpu.pipeline_mode<synchronous>, transform_indices = @transform_3, window_bounds = array<i64: 128, 128>}, {pipeline_mode = #tpu.pipeline_mode<synchronous>, transform_indices = @transform_4, window_bounds = array<i64: 1, 128>}, {transform_indices = @transform_5, window_bounds = array<i64: 8, 128>}]} {
    %c0 = arith.constant 0 : index
    %c0_0 = arith.constant 0 : index
    %0 = vector.load %arg1[%c0, %c0_0] : memref<8x128xf32, #tpu.memory_space<vmem>>, vector<8x128xf32>
    %c0_1 = arith.constant 0 : index
    %c0_2 = arith.constant 0 : index
    %1 = vector.load %arg2[%c0_1, %c0_2] : memref<128x128xf32, #tpu.memory_space<vmem>>, vector<128x128xf32>
    %cst = arith.constant dense<0.000000e+00> : vector<8x128xf32>
    %2 = tpu.matmul %0, %1, %cst {dimension_numbers = #tpu.dot_dimension_numbers<[1], [0], [0], [1], [0, 0, 1, 1], [], []>} : vector<8x128xf32>, vector<128x128xf32>, vector<8x128xf32> -> vector<8x128xf32>
    %c0_3 = arith.constant 0 : index
    %c0_4 = arith.constant 0 : index
    %3 = vector.load %arg3[%c0_3, %c0_4] : memref<1x128xf32, #tpu.memory_space<vmem>>, vector<1x128xf32>
    %4 = vector.broadcast %3 : vector<1x128xf32> to vector<8x128xf32>
    %5 = arith.addf %2, %4 : vector<8x128xf32>
    %cst_5 = arith.constant 0.000000e+00 : f32
    %6 = vector.broadcast %cst_5 : f32 to vector<8x128xf32>
    %7 = arith.maximumf %5, %6 : vector<8x128xf32>
    %c0_6 = arith.constant 0 : index
    %c0_7 = arith.constant 0 : index
    %8 = vector.load %arg4[%c0_6, %c0_7] : memref<128x128xf32, #tpu.memory_space<vmem>>, vector<128x128xf32>
    %cst_8 = arith.constant dense<0.000000e+00> : vector<8x128xf32>
    %9 = tpu.matmul %7, %8, %cst_8 {dimension_numbers = #tpu.dot_dimension_numbers<[1], [0], [0], [1], [0, 0, 1, 1], [], []>} : vector<8x128xf32>, vector<128x128xf32>, vector<8x128xf32> -> vector<8x128xf32>
    %c0_9 = arith.constant 0 : index
    %c0_10 = arith.constant 0 : index
    %10 = vector.load %arg5[%c0_9, %c0_10] : memref<1x128xf32, #tpu.memory_space<vmem>>, vector<1x128xf32>
    %11 = vector.broadcast %10 : vector<1x128xf32> to vector<8x128xf32>
    %12 = arith.addf %9, %11 : vector<8x128xf32>
    %c0_11 = arith.constant 0 : index
    %c0_12 = arith.constant 0 : index
    %13 = vector.load %arg6[%c0_11, %c0_12] : memref<8x128xf32, #tpu.memory_space<vmem>>, vector<8x128xf32>
    tpu.vector_store %arg6[%c0_11, %c0_12], %12 {strides = array<i32>} : memref<8x128xf32, #tpu.memory_space<vmem>>, vector<8x128xf32>,
    return
  }
  func.func @transform_0(%arg0: i32) -> (i32, i32) {
    %c0_i32 = arith.constant 0 : i32
    %c0_i32_0 = arith.constant 0 : i32
    return %arg0, %c0_i32 : i32, i32
  }
  func.func @transform_1(%arg0: i32) -> (i32, i32) {
    %c0_i32 = arith.constant 0 : i32
    %c0_i32_0 = arith.constant 0 : i32
    %c0_i32_1 = arith.constant 0 : i32
    return %c0_i32, %c0_i32_0 : i32, i32
  }
  func.func @transform_2(%arg0: i32) -> (i32, i32) {
    %c0_i32 = arith.constant 0 : i32
    %c0_i32_0 = arith.constant 0 : i32
    %c0_i32_1 = arith.constant 0 : i32
    return %c0_i32, %c0_i32_0 : i32, i32
  }
  func.func @transform_3(%arg0: i32) -> (i32, i32) {
    %c0_i32 = arith.constant 0 : i32
    %c0_i32_0 = arith.constant 0 : i32
    %c0_i32_1 = arith.constant 0 : i32
    return %c0_i32, %c0_i32_0 : i32, i32
  }
  func.func @transform_4(%arg0: i32) -> (i32, i32) {
    %c0_i32 = arith.constant 0 : i32
    %c0_i32_0 = arith.constant 0 : i32
    %c0_i32_1 = arith.constant 0 : i32
    return %c0_i32, %c0_i32_0 : i32, i32
  }
  func.func @transform_5(%arg0: i32) -> (i32, i32) {
    %c0_i32 = arith.constant 0 : i32
    %c0_i32_0 = arith.constant 0 : i32
    return %arg0, %c0_i32 : i32, i32
  }
}

module attributes {stable_mosaic.version = 11 : i64} {
  func.func @_projector_kernel(%arg0: i32, %arg1: memref<8x128xf32, #tpu.memory_space<vmem>>, %arg2: memref<128x128xf32, #tpu.memory_space<vmem>>, %arg3: memref<1x128xf32, #tpu.memory_space<vmem>>, %arg4: memref<128x128xf32, #tpu.memory_space<vmem>>, %arg5: memref<1x128xf32, #tpu.memory_space<vmem>>, %arg6: memref<8x128xf32, #tpu.memory_space<vmem>>) attributes {dimension_semantics = [#tpu.dimension_semantics<parallel>], iteration_bounds = array<i64: 1>, scalar_prefetch = 0 : i64, scratch_operands = 0 : i64, tpu.core_type = #tpu.core_type<tc>, window_params = [{transform_indices = @transform_0, window_bounds = array<i64: 8, 128>}, {pipeline_mode = #tpu.pipeline_mode<synchronous>, transform_indices = @transform_1, window_bounds = array<i64: 128, 128>}, {pipeline_mode = #tpu.pipeline_mode<synchronous>, transform_indices = @transform_2, window_bounds = array<i64: 1, 128>}, {pipeline_mode = #tpu.pipeline_mode<synchronous>, transform_indices = @transform_3, window_bounds = array<i64: 128, 128>}, {pipeline_mode = #tpu.pipeline_mode<synchronous>, transform_indices = @transform_4, window_bounds = array<i64: 1, 128>}, {transform_indices = @transform_5, window_bounds = array<i64: 8, 128>}]} {
    %c0 = arith.constant 0 : index
    %c0_0 = arith.constant 0 : index
    %0 = vector.load %arg1[%c0, %c0_0] : memref<8x128xf32, #tpu.memory_space<vmem>>, vector<8x128xf32>
    %c0_1 = arith.constant 0 : index
    %c0_2 = arith.constant 0 : index
    %1 = vector.load %arg2[%c0_1, %c0_2] : memref<128x128xf32, #tpu.memory_space<vmem>>, vector<128x128xf32>
    %cst = arith.constant dense<0.000000e+00> : vector<8x128xf32>
    %2 = tpu.matmul %0, %1, %cst {dimension_numbers = #tpu.dot_dimension_numbers<[1], [0], [0], [1], [0, 0, 1, 1], [], []>} : vector<8x128xf32>, vector<128x128xf32>, vector<8x128xf32> -> vector<8x128xf32>
    %c0_3 = arith.constant 0 : index
    %c0_4 = arith.constant 0 : index
    %3 = vector.load %arg3[%c0_3, %c0_4] : memref<1x128xf32, #tpu.memory_space<vmem>>, vector<1x128xf32>
    %4 = vector.broadcast %3 : vector<1x128xf32> to vector<8x128xf32>
    %5 = arith.addf %2, %4 : vector<8x128xf32>
    %cst_5 = arith.constant 0.000000e+00 : f32
    %6 = vector.broadcast %cst_5 : f32 to vector<8x128xf32>
    %7 = arith.maximumf %5, %6 : vector<8x128xf32>
    %c0_6 = arith.constant 0 : index
    %c0_7 = arith.constant 0 : index
    %8 = vector.load %arg4[%c0_6, %c0_7] : memref<128x128xf32, #tpu.memory_space<vmem>>, vector<128x128xf32>
    %cst_8 = arith.constant dense<0.000000e+00> : vector<8x128xf32>
    %9 = tpu.matmul %7, %8, %cst_8 {dimension_numbers = #tpu.dot_dimension_numbers<[1], [0], [0], [1], [0, 0, 1, 1], [], []>} : vector<8x128xf32>, vector<128x128xf32>, vector<8x128xf32> -> vector<8x128xf32>
    %c0_9 = arith.constant 0 : index
    %c0_10 = arith.constant 0 : index
    %10 = vector.load %arg5[%c0_9, %c0_10] : memref<1x128xf32, #tpu.memory_space<vmem>>, vector<1x128xf32>
    %11 = vector.broadcast %10 : vector<1x128xf32> to vector<8x128xf32>
    %12 = arith.addf %9, %11 : vector<8x128xf32>
    %c0_11 = arith.constant 0 : index
    %c0_12 = arith.constant 0 : index
    %13 = vector.load %arg6[%c0_11, %c0_12] : memref<8x128xf32, #tpu.memory_space<vmem>>, vector<8x128xf32>
    tpu.vector_store %arg6[%c0_11, %c0_12], %12 {strides = array<i32>} : memref<8x128xf32, #tpu.memory_space<vmem>>, vector<8x128xf32>,
    return
  }
  func.func @transform_0(%arg0: i32) -> (i32, i32) {
    %c0_i32 = arith.constant 0 : i32
    %c0_i32_0 = arith.constant 0 : i32
    return %arg0, %c0_i32 : i32, i32
  }
  func.func @transform_1(%arg0: i32) -> (i32, i32) {
    %c0_i32 = arith.constant 0 : i32
    %c0_i32_0 = arith.constant 0 : i32
    %c0_i32_1 = arith.constant 0 : i32
    return %c0_i32, %c0_i32_0 : i32, i32
  }
  func.func @transform_2(%arg0: i32) -> (i32, i32) {
    %c0_i32 = arith.constant 0 : i32
    %c0_i32_0 = arith.constant 0 : i32
    %c0_i32_1 = arith.constant 0 : i32
    return %c0_i32, %c0_i32_0 : i32, i32
  }
  func.func @transform_3(%arg0: i32) -> (i32, i32) {
    %c0_i32 = arith.constant 0 : i32
    %c0_i32_0 = arith.constant 0 : i32
    %c0_i32_1 = arith.constant 0 : i32
    return %c0_i32, %c0_i32_0 : i32, i32
  }
  func.func @transform_4(%arg0: i32) -> (i32, i32) {
    %c0_i32 = arith.constant 0 : i32
    %c0_i32_0 = arith.constant 0 : i32
    %c0_i32_1 = arith.constant 0 : i32
    return %c0_i32, %c0_i32_0 : i32, i32
  }
  func.func @transform_5(%arg0: i32) -> (i32, i32) {
    %c0_i32 = arith.constant 0 : i32
    %c0_i32_0 = arith.constant 0 : i32
    return %arg0, %c0_i32 : i32, i32
  }
}

</mosaic_0001>

<bundles_post_ra>
// kernel: tpu_custom_call.1
= control target key start
LH: loop header
LB: loop body
LE: loop exit
PB: predicated region body
PF: predicated region fallthrough
CT: control target
= control target key end

     0   :  { %10 = vsyncpa [#allocation3], 0  ;;  %s331_s0 = inlined_call_operand.hbm [shape: f32[8,128], index: 0, kind: input, shape index: {}]   ;;  %s332_s1 = inlined_call_operand.hbm [shape: f32[128,128], index: 1, kind: input, shape index: {}]   ;;  %s333_s2 = inlined_call_operand.vmem [shape: f32[1,128], index: 2, kind: input, shape index: {}]   ;;  %s334_s3 = inlined_call_operand.hbm [shape: f32[128,128], index: 3, kind: input, shape index: {}]   ;;  %s335_s4 = inlined_call_operand.vmem [shape: f32[1,128], index: 4, kind: input, shape index: {}]   ;;  %s336_s5 = inlined_call_operand.hbm [shape: f32[8,128], index: 5, kind: output, shape index: {}]  }
   0x1   :  { %11 = vsyncpa [#allocation6], 0  ;;  %s28_s20 = sshll.u32 %s332_s1, 4  ;;  %s29_s20 = int_to_ptr.hbm [resolvable:$true] %s28_s20 }
   0x2   :  { %12 = vsyncpa [#allocation4], 0  ;;  %s277_s21 = smov [#allocation5]   ;;  %s18_s25 = sshll.u32 %s331_s0, 4  ;;  %s19_s25 = int_to_ptr.hbm [resolvable:$true] %s18_s25 }
   0x3   :  { %s30_s22 = sshll.u32 %s277_s21, 4  ;;  %s278_s26 = smov 128   ;;  %s31_s22 = int_to_ptr.vmem [resolvable:$true] %s30_s22 }
   0x4   :  { %s279_s27 = smov 8   ;;  %s280_s28 = smov [#allocation2]  }
   0x5   :  { %36 = dma.hbm_to_vmem [thread:$0]  %s29_s20, 2048, %s31_s22, [#allocation6], %s278_s26, %s278_s26, %s279_s27  }
   0x6   :  { %s20_s29 = sshll.u32 %s280_s28, 4  ;;  %s43_s7 = sshll.u32 %s334_s3, 4  ;;  %s21_s29 = int_to_ptr.vmem [resolvable:$true] %s20_s29  ;;  %s44_s7 = int_to_ptr.hbm [resolvable:$true] %s43_s7 }
   0x7   :  { %23 = dma.hbm_to_vmem [thread:$0]  %s19_s25, 128, %s21_s29, [#allocation3]  }
   0x8   :  { %s281_s1 = smov [#allocation7]  }
   0x9   :  { %s45_s8 = sshll.u32 %s281_s1, 4  ;;  %s46_s8 = int_to_ptr.vmem [resolvable:$true] %s45_s8 }
   0xa   :  { %51 = dma.hbm_to_vmem [thread:$0]  %s44_s7, 2048, %s46_s8, [#allocation6], %s278_s26, %s278_s26, %s279_s27  }
   0xb   :  { %271 = dma.done.wait [#allocation3], 128  }
   0xc   :  { %272 = vsyncadd [#allocation3], 4294967168 }
   0xd   :  { %273 = dma.done.wait [#allocation6], 4096  }
   0xe   :  { %274 = vsyncadd [#allocation6], 4294963200  ;;  %v82_v0 = vld [vmem:[#allocation5 + $0x78] sm:$0xff]  ;;  %v81_v1 = vld [vmem:[#allocation5 + $0x70] sm:$0xff]  ;;  %s282_s11 = smov [#allocation8]   ;;  %s156_s15 = sshll.u32 %s336_s5, 4  ;;  %s157_s15 = int_to_ptr.hbm [resolvable:$true] %s156_s15 }
   0xf   :  { %87 = vmatpush.msra.mxu0 %v82_v0  ;;  %v80_v2 = vld [vmem:[#allocation5 + $0x68] sm:$0xff]  ;;  %v79_v3 = vld [vmem:[#allocation5 + $0x60] sm:$0xff]  ;;  %v123_v4 = vld [vmem:[#allocation7 + $0x78] sm:$0xff]  ;;  %s154_s12 = sshll.u32 %s282_s11, 4  ;;  %s155_s12 = int_to_ptr.vmem [resolvable:$true] %s154_s12 }
  0x10   :  { %v78_v5 = vld [vmem:[#allocation5 + $0x58] sm:$0xff]  ;;  %128 = vmatpush.msra.mxu1 %v123_v4  ;;  %v122_v6 = vld [vmem:[#allocation7 + $0x70] sm:$0xff]  ;;  %v121_v7 = vld [vmem:[#allocation7 + $0x68] sm:$0xff] }
  0x11   :  { %88 = vmatpush.msra.mxu0 %v81_v1  ;;  %v77_v8 = vld [vmem:[#allocation5 + $0x50] sm:$0xff]  ;;  %v120_v9 = vld [vmem:[#allocation7 + $0x60] sm:$0xff]  ;;  %v76_v10 = vld [vmem:[#allocation5 + $0x48] sm:$0xff] }
  0x12   :  { %129 = vmatpush.msra.mxu1 %v122_v6  ;;  %v119_v11 = vld [vmem:[#allocation7 + $0x58] sm:$0xff]  ;;  %v75_v12 = vld [vmem:[#allocation5 + $0x40] sm:$0xff]  ;;  %v118_v13 = vld [vmem:[#allocation7 + $0x50] sm:$0xff] }
  0x13   :  { %89 = vmatpush.msra.mxu0 %v80_v2  ;;  %v74_v14 = vld [vmem:[#allocation5 + $0x38] sm:$0xff]  ;;  %v117_v15 = vld [vmem:[#allocation7 + $0x48] sm:$0xff]  ;;  %v73_v16 = vld [vmem:[#allocation5 + $0x30] sm:$0xff] }
  0x14   :  { %130 = vmatpush.msra.mxu1 %v121_v7  ;;  %v116_v17 = vld [vmem:[#allocation7 + $0x40] sm:$0xff]  ;;  %v72_v18 = vld [vmem:[#allocation5 + $0x28] sm:$0xff]  ;;  %v115_v19 = vld [vmem:[#allocation7 + $0x38] sm:$0xff] }
  0x15   :  { %90 = vmatpush.msra.mxu0 %v79_v3  ;;  %v71_v20 = vld [vmem:[#allocation5 + $0x20] sm:$0xff]  ;;  %v114_v21 = vld [vmem:[#allocation7 + $0x30] sm:$0xff]  ;;  %v70_v22 = vld [vmem:[#allocation5 + $0x18] sm:$0xff] }
  0x16   :  { %131 = vmatpush.msra.mxu1 %v120_v9  ;;  %v113_v23 = vld [vmem:[#allocation7 + $0x28] sm:$0xff]  ;;  %v69_v24 = vld [vmem:[#allocation5 + $0x10] sm:$0xff]  ;;  %v112_v25 = vld [vmem:[#allocation7 + $0x20] sm:$0xff] }
  0x17   :  { %91 = vmatpush.msra.mxu0 %v78_v5  ;;  %v68_v26 = vld [vmem:[#allocation5 + $0x8] sm:$0xff]  ;;  %v111_v27 = vld [vmem:[#allocation7 + $0x18] sm:$0xff]  ;;  %v67_v28 = vld [vmem:[#allocation5] sm:$0xff] }
  0x18   :  { %132 = vmatpush.msra.mxu1 %v119_v11  ;;  %v66_v29 = vld [vmem:[#allocation2] sm:$0xff]  ;;  %v110_v30 = vld [vmem:[#allocation7 + $0x10] sm:$0xff]  ;;  %v109_v31 = vld [vmem:[#allocation7 + $0x8] sm:$0xff] }
  0x19   :  { %92 = vmatpush.msra.mxu0 %v77_v8  ;;  %v108_v32 = vld [vmem:[#allocation7] sm:$0xff]  ;;  %v173_v33 = vld [vmem:[%s333_s2] ss:$0 sm:$0xff] }
  0x1a   :  { %133 = vmatpush.msra.mxu1 %v118_v13  ;;  %v174_v37 = vld [vmem:[%s335_s4] ss:$0 sm:$0xff] }
  0x1b   :  { %93 = vmatpush.msra.mxu0 %v76_v10 }
  0x1c   :  { %134 = vmatpush.msra.mxu1 %v117_v15 }
  0x1d   :  { %94 = vmatpush.msra.mxu0 %v75_v12 }
  0x1e   :  { %135 = vmatpush.msra.mxu1 %v116_v17 }
  0x1f   :  { %95 = vmatpush.msra.mxu0 %v74_v14 }
  0x20   :  { %136 = vmatpush.msra.mxu1 %v115_v19 }
  0x21   :  { %96 = vmatpush.msra.mxu0 %v73_v16 }
  0x22   :  { %137 = vmatpush.msra.mxu1 %v114_v21 }
  0x23   :  { %97 = vmatpush.msra.mxu0 %v72_v18 }
  0x24   :  { %138 = vmatpush.msra.mxu1 %v113_v23 }
  0x25   :  { %98 = vmatpush.msra.mxu0 %v71_v20 }
  0x26   :  { %139 = vmatpush.msra.mxu1 %v112_v25 }
  0x27   :  { %99 = vmatpush.msra.mxu0 %v70_v22 }
  0x28   :  { %140 = vmatpush.msra.mxu1 %v111_v27 }
  0x29   :  { %100 = vmatpush.msra.mxu0 %v69_v24 }
  0x2a   :  { %141 = vmatpush.msra.mxu1 %v110_v30 }
  0x2b   :  { %101 = vmatpush.msra.mxu0 %v68_v26 }
  0x2c   :  { %142 = vmatpush.msra.mxu1 %v109_v31 }
  0x2d   :  { %102 = vmatpush.msra.mxu0 %v67_v28 }
  0x2e   :  { %103 = vmatmul.f32.vlgmr.msra.gmra.mxu0 %v66_v29  ;;  %143 = vmatpush.msra.mxu1 %v108_v32 }
  0xab   :  { %v104_v34 = vpop.f32.mrf.mxu0 }
  0xac   :  { %v105_v35 = vadd.f32 %v173_v33, %v104_v34 }
  0xae   :  { %v107_v36 = vmax.f32 %v105_v35, 0.0 }
  0xb0   :  { %144 = vmatmul.f32.vlgmr.msra.gmra.mxu1 %v107_v36 }
 0x12d   :  { %v145_v38 = vpop.f32.mrf.mxu1 }
 0x12e   :  { %v146_v39 = vadd.f32 %v174_v37, %v145_v38 }
 0x130   :  { %148 = vst [vmem:[#allocation8] sm:$0xff] %v146_v39 }
 0x131   :  { %159 = dma.vmem_to_hbm [thread:$0]  %s155_s12, 128, %s157_s15, [#allocation4]  }
 0x132   :  { %275 = dma.done.wait [#allocation4], 128  }
 0x133   :  { %276 = vsyncadd [#allocation4], 4294967168 }
 0x134   :  { %164 = vsyncpa [#allocation3], 1 }
 0x135   :  { %165 = vsyncpa [#allocation6], 1 }
 0x136   :  { %166 = vsyncpa [#allocation4], 1 }

// kernel: tpu_custom_call.1
= control target key start
LH: loop header
LB: loop body
LE: loop exit
PB: predicated region body
PF: predicated region fallthrough
CT: control target
= control target key end

     0   :  { %10 = vsyncpa [#allocation3], 0  ;;  %s331_s0 = inlined_call_operand.hbm [shape: f32[8,128], index: 0, kind: input, shape index: {}]   ;;  %s332_s1 = inlined_call_operand.hbm [shape: f32[128,128], index: 1, kind: input, shape index: {}]   ;;  %s333_s2 = inlined_call_operand.vmem [shape: f32[1,128], index: 2, kind: input, shape index: {}]   ;;  %s334_s3 = inlined_call_operand.hbm [shape: f32[128,128], index: 3, kind: input, shape index: {}]   ;;  %s335_s4 = inlined_call_operand.vmem [shape: f32[1,128], index: 4, kind: input, shape index: {}]   ;;  %s336_s5 = inlined_call_operand.hbm [shape: f32[8,128], index: 5, kind: output, shape index: {}]  }
   0x1   :  { %11 = vsyncpa [#allocation6], 0  ;;  %s28_s20 = sshll.u32 %s332_s1, 4  ;;  %s29_s20 = int_to_ptr.hbm [resolvable:$true] %s28_s20 }
   0x2   :  { %12 = vsyncpa [#allocation4], 0  ;;  %s277_s21 = smov [#allocation5]   ;;  %s18_s25 = sshll.u32 %s331_s0, 4  ;;  %s19_s25 = int_to_ptr.hbm [resolvable:$true] %s18_s25 }
   0x3   :  { %s30_s22 = sshll.u32 %s277_s21, 4  ;;  %s278_s26 = smov 128   ;;  %s31_s22 = int_to_ptr.vmem [resolvable:$true] %s30_s22 }
   0x4   :  { %s279_s27 = smov 8   ;;  %s280_s28 = smov [#allocation2]  }
   0x5   :  { %36 = dma.hbm_to_vmem [thread:$0]  %s29_s20, 2048, %s31_s22, [#allocation6], %s278_s26, %s278_s26, %s279_s27  }
   0x6   :  { %s20_s29 = sshll.u32 %s280_s28, 4  ;;  %s43_s7 = sshll.u32 %s334_s3, 4  ;;  %s21_s29 = int_to_ptr.vmem [resolvable:$true] %s20_s29  ;;  %s44_s7 = int_to_ptr.hbm [resolvable:$true] %s43_s7 }
   0x7   :  { %23 = dma.hbm_to_vmem [thread:$0]  %s19_s25, 128, %s21_s29, [#allocation3]  }
   0x8   :  { %s281_s1 = smov [#allocation7]  }
   0x9   :  { %s45_s8 = sshll.u32 %s281_s1, 4  ;;  %s46_s8 = int_to_ptr.vmem [resolvable:$true] %s45_s8 }
   0xa   :  { %51 = dma.hbm_to_vmem [thread:$0]  %s44_s7, 2048, %s46_s8, [#allocation6], %s278_s26, %s278_s26, %s279_s27  }
   0xb   :  { %271 = dma.done.wait [#allocation3], 128  }
   0xc   :  { %272 = vsyncadd [#allocation3], 4294967168 }
   0xd   :  { %273 = dma.done.wait [#allocation6], 4096  }
   0xe   :  { %274 = vsyncadd [#allocation6], 4294963200  ;;  %v82_v0 = vld [vmem:[#allocation5 + $0x78] sm:$0xff]  ;;  %v81_v1 = vld [vmem:[#allocation5 + $0x70] sm:$0xff]  ;;  %s282_s11 = smov [#allocation8]   ;;  %s156_s15 = sshll.u32 %s336_s5, 4  ;;  %s157_s15 = int_to_ptr.hbm [resolvable:$true] %s156_s15 }
   0xf   :  { %87 = vmatpush.msra.mxu0 %v82_v0  ;;  %v80_v2 = vld [vmem:[#allocation5 + $0x68] sm:$0xff]  ;;  %v79_v3 = vld [vmem:[#allocation5 + $0x60] sm:$0xff]  ;;  %v123_v4 = vld [vmem:[#allocation7 + $0x78] sm:$0xff]  ;;  %s154_s12 = sshll.u32 %s282_s11, 4  ;;  %s155_s12 = int_to_ptr.vmem [resolvable:$true] %s154_s12 }
  0x10   :  { %v78_v5 = vld [vmem:[#allocation5 + $0x58] sm:$0xff]  ;;  %128 = vmatpush.msra.mxu1 %v123_v4  ;;  %v122_v6 = vld [vmem:[#allocation7 + $0x70] sm:$0xff]  ;;  %v121_v7 = vld [vmem:[#allocation7 + $0x68] sm:$0xff] }
  0x11   :  { %88 = vmatpush.msra.mxu0 %v81_v1  ;;  %v77_v8 = vld [vmem:[#allocation5 + $0x50] sm:$0xff]  ;;  %v120_v9 = vld [vmem:[#allocation7 + $0x60] sm:$0xff]  ;;  %v76_v10 = vld [vmem:[#allocation5 + $0x48] sm:$0xff] }
  0x12   :  { %129 = vmatpush.msra.mxu1 %v122_v6  ;;  %v119_v11 = vld [vmem:[#allocation7 + $0x58] sm:$0xff]  ;;  %v75_v12 = vld [vmem:[#allocation5 + $0x40] sm:$0xff]  ;;  %v118_v13 = vld [vmem:[#allocation7 + $0x50] sm:$0xff] }
  0x13   :  { %89 = vmatpush.msra.mxu0 %v80_v2  ;;  %v74_v14 = vld [vmem:[#allocation5 + $0x38] sm:$0xff]  ;;  %v117_v15 = vld [vmem:[#allocation7 + $0x48] sm:$0xff]  ;;  %v73_v16 = vld [vmem:[#allocation5 + $0x30] sm:$0xff] }
  0x14   :  { %130 = vmatpush.msra.mxu1 %v121_v7  ;;  %v116_v17 = vld [vmem:[#allocation7 + $0x40] sm:$0xff]  ;;  %v72_v18 = vld [vmem:[#allocation5 + $0x28] sm:$0xff]  ;;  %v115_v19 = vld [vmem:[#allocation7 + $0x38] sm:$0xff] }
  0x15   :  { %90 = vmatpush.msra.mxu0 %v79_v3  ;;  %v71_v20 = vld [vmem:[#allocation5 + $0x20] sm:$0xff]  ;;  %v114_v21 = vld [vmem:[#allocation7 + $0x30] sm:$0xff]  ;;  %v70_v22 = vld [vmem:[#allocation5 + $0x18] sm:$0xff] }
  0x16   :  { %131 = vmatpush.msra.mxu1 %v120_v9  ;;  %v113_v23 = vld [vmem:[#allocation7 + $0x28] sm:$0xff]  ;;  %v69_v24 = vld [vmem:[#allocation5 + $0x10] sm:$0xff]  ;;  %v112_v25 = vld [vmem:[#allocation7 + $0x20] sm:$0xff] }
  0x17   :  { %91 = vmatpush.msra.mxu0 %v78_v5  ;;  %v68_v26 = vld [vmem:[#allocation5 + $0x8] sm:$0xff]  ;;  %v111_v27 = vld [vmem:[#allocation7 + $0x18] sm:$0xff]  ;;  %v67_v28 = vld [vmem:[#allocation5] sm:$0xff] }
  0x18   :  { %132 = vmatpush.msra.mxu1 %v119_v11  ;;  %v66_v29 = vld [vmem:[#allocation2] sm:$0xff]  ;;  %v110_v30 = vld [vmem:[#allocation7 + $0x10] sm:$0xff]  ;;  %v109_v31 = vld [vmem:[#allocation7 + $0x8] sm:$0xff] }
  0x19   :  { %92 = vmatpush.msra.mxu0 %v77_v8  ;;  %v108_v32 = vld [vmem:[#allocation7] sm:$0xff]  ;;  %v173_v33 = vld [vmem:[%s333_s2] ss:$0 sm:$0xff] }
  0x1a   :  { %133 = vmatpush.msra.mxu1 %v118_v13  ;;  %v174_v37 = vld [vmem:[%s335_s4] ss:$0 sm:$0xff] }
  0x1b   :  { %93 = vmatpush.msra.mxu0 %v76_v10 }
  0x1c   :  { %134 = vmatpush.msra.mxu1 %v117_v15 }
  0x1d   :  { %94 = vmatpush.msra.mxu0 %v75_v12 }
  0x1e   :  { %135 = vmatpush.msra.mxu1 %v116_v17 }
  0x1f   :  { %95 = vmatpush.msra.mxu0 %v74_v14 }
  0x20   :  { %136 = vmatpush.msra.mxu1 %v115_v19 }
  0x21   :  { %96 = vmatpush.msra.mxu0 %v73_v16 }
  0x22   :  { %137 = vmatpush.msra.mxu1 %v114_v21 }
  0x23   :  { %97 = vmatpush.msra.mxu0 %v72_v18 }
  0x24   :  { %138 = vmatpush.msra.mxu1 %v113_v23 }
  0x25   :  { %98 = vmatpush.msra.mxu0 %v71_v20 }
  0x26   :  { %139 = vmatpush.msra.mxu1 %v112_v25 }
  0x27   :  { %99 = vmatpush.msra.mxu0 %v70_v22 }
  0x28   :  { %140 = vmatpush.msra.mxu1 %v111_v27 }
  0x29   :  { %100 = vmatpush.msra.mxu0 %v69_v24 }
  0x2a   :  { %141 = vmatpush.msra.mxu1 %v110_v30 }
  0x2b   :  { %101 = vmatpush.msra.mxu0 %v68_v26 }
  0x2c   :  { %142 = vmatpush.msra.mxu1 %v109_v31 }
  0x2d   :  { %102 = vmatpush.msra.mxu0 %v67_v28 }
  0x2e   :  { %103 = vmatmul.f32.vlgmr.msra.gmra.mxu0 %v66_v29  ;;  %143 = vmatpush.msra.mxu1 %v108_v32 }
  0xab   :  { %v104_v34 = vpop.f32.mrf.mxu0 }
  0xac   :  { %v105_v35 = vadd.f32 %v173_v33, %v104_v34 }
  0xae   :  { %v107_v36 = vmax.f32 %v105_v35, 0.0 }
  0xb0   :  { %144 = vmatmul.f32.vlgmr.msra.gmra.mxu1 %v107_v36 }
 0x12d   :  { %v145_v38 = vpop.f32.mrf.mxu1 }
 0x12e   :  { %v146_v39 = vadd.f32 %v174_v37, %v145_v38 }
 0x130   :  { %148 = vst [vmem:[#allocation8] sm:$0xff] %v146_v39 }
 0x131   :  { %159 = dma.vmem_to_hbm [thread:$0]  %s155_s12, 128, %s157_s15, [#allocation4]  }
 0x132   :  { %275 = dma.done.wait [#allocation4], 128  }
 0x133   :  { %276 = vsyncadd [#allocation4], 4294967168 }
 0x134   :  { %164 = vsyncpa [#allocation3], 1 }
 0x135   :  { %165 = vsyncpa [#allocation6], 1 }
 0x136   :  { %166 = vsyncpa [#allocation4], 1 }

</bundles_post_ra>
